<compile_context>
chip_gen: v7x
topology: tpu7x:2x2x1
jax: 0.10.0
libtpu: 0.0.40
codegen_flags: <defaults>
</compile_context>

<pallas_src>
import functools
import math

import jax
import jax.numpy as jnp
from jax.experimental import pallas as pl
from jax.experimental.pallas import tpu as pltpu


def _round_up(x, m):
    return (x + m - 1) // m * m


def time_embedding_kernel(t_ref, w_sin_ref, w_cos_ref, b_ref, out_ref, *,
                          half, neg_log_scale):
    # t_ref:     (tile_b, 1)        f32
    # w_sin_ref: (half, dim_pad)    f32   rows [0:half)   of W.T, cols zero-padded
    # w_cos_ref: (half, dim_pad)    f32   rows [half:dim) of W.T, cols zero-padded
    # b_ref:     (1, dim_pad)       f32
    # out_ref:   (tile_b, dim_pad)  f32
    #
    # Frequencies computed in-kernel: exp(k * -(log(1e4)/(half-1))), k = 0..half-1.
    k = jax.lax.broadcasted_iota(jnp.int32, (1, half), 1).astype(jnp.float32)
    freqs = jnp.exp(k * neg_log_scale)                         # (1, half)  EUP
    arg = t_ref[...] * freqs                                   # (tile_b, half)

    # Split dot == dot(concat([sin, cos]), W.T); avoids the concatenate entirely.
    acc = jnp.dot(jnp.sin(arg), w_sin_ref[...],
                  preferred_element_type=jnp.float32)
    acc = acc + jnp.dot(jnp.cos(arg), w_cos_ref[...],
                        preferred_element_type=jnp.float32)
    out_ref[...] = acc + b_ref[...]


def prepare_time_embedding_params(weight, bias, dim):
    """One-time parameter prep (hoisted out of the per-call path).

    weight: (dim, dim) PyTorch Linear convention (out, in). bias: (dim,).
    Returns (w_sin, w_cos, b_pad) with the output axis zero-padded to a
    multiple of 128 lanes.
    """
    assert dim % 2 == 0, "TimeEmbedding requires even dim"
    half = dim // 2
    dim_pad = _round_up(dim, 128)
    w_t = weight.astype(jnp.float32).T                          # (in=dim, out=dim)
    w_pad = jnp.zeros((dim, dim_pad), jnp.float32).at[:, :dim].set(w_t)
    w_sin = w_pad[:half]                                        # (half, dim_pad)
    w_cos = w_pad[half:]                                        # (half, dim_pad)
    b_pad = jnp.zeros((1, dim_pad), jnp.float32).at[:, :dim].set(
        bias.astype(jnp.float32))
    return w_sin, w_cos, b_pad


def time_embedding(t, params, dim, *, tile_b=256):
    """t: (B,) timesteps. params: output of prepare_time_embedding_params.
    Returns (B, dim) float32, matching TimeEmbedding.forward."""
    w_sin, w_cos, b_pad = params
    half = dim // 2
    dim_pad = b_pad.shape[1]
    B = t.shape[0]

    # Row tiling: multiple of 8 sublanes, capped at tile_b; pad B up to a tile.
    tile_b = min(tile_b, _round_up(B, 8))
    b_pad_rows = _round_up(B, tile_b)
    num_tiles = b_pad_rows // tile_b

    t2d = jnp.zeros((b_pad_rows, 1), jnp.float32).at[:B, 0].set(
        t.astype(jnp.float32))

    neg_log_scale = -(math.log(10000.0) / (half - 1))
    kernel = functools.partial(time_embedding_kernel, half=half,
                               neg_log_scale=neg_log_scale)

    out = pl.pallas_call(
        kernel,
        out_shape=jax.ShapeDtypeStruct((b_pad_rows, dim_pad), jnp.float32),
        grid=(num_tiles,),
        in_specs=[
            pl.BlockSpec((tile_b, 1), lambda i: (i, 0)),          # t rows
            pl.BlockSpec((half, dim_pad), lambda i: (0, 0)),      # W.T[:half], resident
            pl.BlockSpec((half, dim_pad), lambda i: (0, 0)),      # W.T[half:], resident
            pl.BlockSpec((1, dim_pad), lambda i: (0, 0)),         # bias, resident
        ],
        out_specs=pl.BlockSpec((tile_b, dim_pad), lambda i: (i, 0)),
        compiler_params=pltpu.CompilerParams(
            dimension_semantics=("parallel",),
        ),
    )(t2d, w_sin, w_cos, b_pad)

    return out[:B, :dim]


def time_embedding_ref(t, weight, bias, dim):
    """Pure-JAX reference mirroring the PyTorch forward."""
    half = dim // 2
    freqs = jnp.exp(
        jnp.arange(half, dtype=jnp.float32) * (-(math.log(10000.0) / (half - 1)))
    )
    emb = t.astype(jnp.float32)[:, None] * freqs[None]
    emb = jnp.concatenate([jnp.sin(emb), jnp.cos(emb)], axis=-1)
    return emb @ weight.T + bias


if __name__ == "__main__":
    B = 8
    dim = 32

    key = jax.random.PRNGKey(0)
    k_t, k_w, k_b = jax.random.split(key, 3)

    # Timesteps (like diffusion timesteps)
    t = jax.random.randint(k_t, (B,), 0, 1000).astype(jnp.float32)

    # Deterministic Linear(dim, dim) params (PyTorch convention: weight (out, in))
    bound = 1.0 / math.sqrt(dim)
    weight = jax.random.uniform(k_w, (dim, dim), jnp.float32, -bound, bound)
    bias = jax.random.uniform(k_b, (dim,), jnp.float32, -bound, bound)

    params = prepare_time_embedding_params(weight, bias, dim)  # one-time prep
    out = time_embedding(t, params, dim)
    out = jax.block_until_ready(out)

    ref = time_embedding_ref(t, weight, bias, dim)
    assert out.shape == (B, dim) and out.dtype == jnp.float32
    assert jnp.allclose(out, ref, atol=1e-4, rtol=1e-4), "mismatch vs reference"

    print("KERNEL_OK")
</pallas_src>

<mosaic_0001>
module attributes {stable_mosaic.version = 11 : i64} {
  func.func @time_embedding_kernel(%arg0: i32, %arg1: memref<8x1xf32, #tpu.memory_space<vmem>>, %arg2: memref<16x128xf32, #tpu.memory_space<vmem>>, %arg3: memref<16x128xf32, #tpu.memory_space<vmem>>, %arg4: memref<1x128xf32, #tpu.memory_space<vmem>>, %arg5: memref<8x128xf32, #tpu.memory_space<vmem>>) attributes {dimension_semantics = [#tpu.dimension_semantics<parallel>], iteration_bounds = array<i64: 1>, scalar_prefetch = 0 : i64, scratch_operands = 0 : i64, tpu.core_type = #tpu.core_type<tc>, window_params = [{transform_indices = @transform_0, window_bounds = array<i64: 8, 1>}, {pipeline_mode = #tpu.pipeline_mode<synchronous>, transform_indices = @transform_1, window_bounds = array<i64: 16, 128>}, {pipeline_mode = #tpu.pipeline_mode<synchronous>, transform_indices = @transform_2, window_bounds = array<i64: 16, 128>}, {pipeline_mode = #tpu.pipeline_mode<synchronous>, transform_indices = @transform_3, window_bounds = array<i64: 1, 128>}, {transform_indices = @transform_4, window_bounds = array<i64: 8, 128>}]} {
    %0 = tpu.iota {dimensions = array<i32: 1>} : vector<1x16xi32>
    %1 = arith.sitofp %0 : vector<1x16xi32> to vector<1x16xf32>
    %cst = arith.constant -0.614022672 : f32
    %2 = vector.broadcast %cst : f32 to vector<1x16xf32>
    %3 = arith.mulf %1, %2 : vector<1x16xf32>
    %4 = math.exp %3 : vector<1x16xf32>
    %c0 = arith.constant 0 : index
    %c0_0 = arith.constant 0 : index
    %5 = vector.load %arg1[%c0, %c0_0] : memref<8x1xf32, #tpu.memory_space<vmem>>, vector<8x1xf32>
    %6 = vector.broadcast %5 : vector<8x1xf32> to vector<8x16xf32>
    %7 = vector.broadcast %4 : vector<1x16xf32> to vector<8x16xf32>
    %8 = arith.mulf %6, %7 : vector<8x16xf32>
    %9 = math.sin %8 : vector<8x16xf32>
    %c0_1 = arith.constant 0 : index
    %c0_2 = arith.constant 0 : index
    %10 = vector.load %arg2[%c0_1, %c0_2] : memref<16x128xf32, #tpu.memory_space<vmem>>, vector<16x128xf32>
    %cst_3 = arith.constant dense<0.000000e+00> : vector<8x128xf32>
    %11 = tpu.matmul %9, %10, %cst_3 {dimension_numbers = #tpu.dot_dimension_numbers<[1], [0], [0], [1], [0, 0, 1, 1], [], []>} : vector<8x16xf32>, vector<16x128xf32>, vector<8x128xf32> -> vector<8x128xf32>
    %12 = math.cos %8 : vector<8x16xf32>
    %c0_4 = arith.constant 0 : index
    %c0_5 = arith.constant 0 : index
    %13 = vector.load %arg3[%c0_4, %c0_5] : memref<16x128xf32, #tpu.memory_space<vmem>>, vector<16x128xf32>
    %cst_6 = arith.constant dense<0.000000e+00> : vector<8x128xf32>
    %14 = tpu.matmul %12, %13, %cst_6 {dimension_numbers = #tpu.dot_dimension_numbers<[1], [0], [0], [1], [0, 0, 1, 1], [], []>} : vector<8x16xf32>, vector<16x128xf32>, vector<8x128xf32> -> vector<8x128xf32>
    %15 = arith.addf %11, %14 : vector<8x128xf32>
    %c0_7 = arith.constant 0 : index
    %c0_8 = arith.constant 0 : index
    %16 = vector.load %arg4[%c0_7, %c0_8] : memref<1x128xf32, #tpu.memory_space<vmem>>, vector<1x128xf32>
    %17 = vector.broadcast %16 : vector<1x128xf32> to vector<8x128xf32>
    %18 = arith.addf %15, %17 : vector<8x128xf32>
    %c0_9 = arith.constant 0 : index
    %c0_10 = arith.constant 0 : index
    %19 = vector.load %arg5[%c0_9, %c0_10] : memref<8x128xf32, #tpu.memory_space<vmem>>, vector<8x128xf32>
    tpu.vector_store %arg5[%c0_9, %c0_10], %18 {strides = array<i32>} : memref<8x128xf32, #tpu.memory_space<vmem>>, vector<8x128xf32>,
    return
  }
  func.func @transform_0(%arg0: i32) -> (i32, i32) {
    %c0_i32 = arith.constant 0 : i32
    %c0_i32_0 = arith.constant 0 : i32
    return %arg0, %c0_i32 : i32, i32
  }
  func.func @transform_1(%arg0: i32) -> (i32, i32) {
    %c0_i32 = arith.constant 0 : i32
    %c0_i32_0 = arith.constant 0 : i32
    %c0_i32_1 = arith.constant 0 : i32
    return %c0_i32, %c0_i32_0 : i32, i32
  }
  func.func @transform_2(%arg0: i32) -> (i32, i32) {
    %c0_i32 = arith.constant 0 : i32
    %c0_i32_0 = arith.constant 0 : i32
    %c0_i32_1 = arith.constant 0 : i32
    return %c0_i32, %c0_i32_0 : i32, i32
  }
  func.func @transform_3(%arg0: i32) -> (i32, i32) {
    %c0_i32 = arith.constant 0 : i32
    %c0_i32_0 = arith.constant 0 : i32
    %c0_i32_1 = arith.constant 0 : i32
    return %c0_i32, %c0_i32_0 : i32, i32
  }
  func.func @transform_4(%arg0: i32) -> (i32, i32) {
    %c0_i32 = arith.constant 0 : i32
    %c0_i32_0 = arith.constant 0 : i32
    return %arg0, %c0_i32 : i32, i32
  }
}

</mosaic_0001>

<bundles_post_ra>
// kernel: tpu_custom_call.1
= control target key start
LH: loop header
LB: loop body
LE: loop exit
PB: predicated region body
PF: predicated region fallthrough
CT: control target
= control target key end

     0   :  { %9 = vsyncpa [#allocation3], 0  ;;  %s635_s0 = inlined_call_operand.vmem [shape: f32[8,1], index: 0, kind: input, shape index: {}]   ;;  %s636_s1 = inlined_call_operand.hbm [shape: f32[16,128], index: 1, kind: input, shape index: {}]   ;;  %s637_s2 = inlined_call_operand.vmem [shape: f32[16,128], index: 2, kind: input, shape index: {}]   ;;  %s638_s3 = inlined_call_operand.vmem [shape: f32[1,128], index: 3, kind: input, shape index: {}]   ;;  %s639_s4 = inlined_call_operand.hbm [shape: f32[8,128], index: 4, kind: output, shape index: {}]  }
   0x1   :  { %10 = vsyncpa [#allocation4], 0  ;;  %s537_s15 = smov [#allocation2]   ;;  %s489_s19 = scalar_lea.hbm %s636_s1, 256 }
   0x2   :  { %s18_s16 = sshll.u32 %s537_s15, 4  ;;  %p490_p0 = scmp.ne.s32.totalorder %s636_s1, %s489_s19  ;;  %s19_s16 = int_to_ptr.vmem [resolvable:$true] %s18_s16 }
   0x3   :  { %p493_p1 = scmp.lt.u32.totalorder %s489_s19, %s636_s1 }
   0x5   :  { %p495_p2 = pnand %p493_p1, %p490_p0 }
   0x7   :  { %498 = shalt.err (!%p495_p2)
}
   0x8   :  { %s499_s24 = scalar_lea.vmem %s19_s16, 256  ;;  %p504_p4 = scmp.lt.s32.totalorder %s19_s16, %s19_s16 }
   0x9   :  { %p500_p3 = scmp.ne.s32.totalorder %s19_s16, %s499_s24  ;;  %p505_p5 = scmp.lt.s32.totalorder %s499_s24, %s499_s24 }
   0xb   :  { %p506_p6 = por %p505_p5, %p504_p4 }
   0xd   :  { %p507_p7 = pnand %p506_p6, %p500_p3 }
   0xf   :  { %510 = shalt.err (!%p507_p7)
}
  0x10   :  { %s538_s25 = smov 128   ;;  %s539_s26 = smov 8  }
  0x11   :  { %24 = dma.hbm_to_vmem [thread:$0]  %s636_s1, 256, %s19_s16, [#allocation3], %s538_s25, %s538_s25, %s539_s26  }
  0x12   :  { %533 = dma.done.wait [#allocation3], 256  }
  0x13   :  { %534 = vsyncadd [#allocation3], 4294967040  ;;  %v540_v0 = vmov 0   ;;  %v38_v1 = vld [vmem:[%s635_s0] sm:$0xff]  ;;  %v255_v3 = vld [vmem:[%s637_s2 + $0x8] sm:$0xff]  ;;  %v541_v5 = vmov 0.0|0.0   ;;  %v32_v10 = vlaneseq }
  0x14   :  { %482 = vset.pattern.permute.xlu0 %v540_v0  ;;  %v254_v2 = vld [vmem:[%s637_s2] sm:$0xff]  ;;  %v149_v4 = vld [vmem:[#allocation2] sm:$0xff]  ;;  %458 = vmatprep.subr.bf16.mxu0 %v541_v5  ;;  %vm542_vm0 = vmmov 0   ;;  %v543_v9 = vmov 0.0   ;;  %v544_v28 = vmov 683565275  }
  0x15   :  { %41 = vperm.xlu0 %482, %v38_v1   ;;  %461 = vmatprep.subr.bf16.mxu1 %v541_v5  ;;  %v459_v6 = vpack.c.bf16 %v255_v3, %v254_v2  ;;  %v150_v7 = vld [vmem:[#allocation2 + $0x8] sm:$0xff]  ;;  %v33_v11 = vand.u32 127, %v32_v10  ;;  %v545_v30 = vmov 2475754826   ;;  %v546_v33 = vmov 2131351028  }
  0x16   :  { %v462_v8 = vpack.c.bf16 %v150_v7, %v149_v4  ;;  %448 = vmatprep.mubr.msk.f32.mxu0 %vm542_vm0, %v543_v9  ;;  %455 = vmatprep.mubr.msk.f32.mxu1 %vm542_vm0, %v543_v9  ;;  %v547_v36 = vmov 2102212464   ;;  %v548_v39 = vmov 920167782   ;;  %v549_v42 = vmov 1326507024  }
  0x17   :  { %460 = vmatpush3.bf16.msra.mxu0 %v459_v6  ;;  %v34_v12 = vcvt.s32.f32 %v33_v11  ;;  %vm256_vm11 = vcmask 130048   ;;  %s550_s2 = smov [#allocation5]  }
  0x18   :  { %463 = vmatpush3.bf16.msra.mxu1 %v462_v8  ;;  %s418_s9 = sshll.u32 %s550_s2, 4  ;;  %s419_s9 = int_to_ptr.vmem [resolvable:$true] %s418_s9 }
  0x19   :  { %v35_v13 = vmul.f32 -0.6140227, %v34_v12  ;;  %s511_s10 = scalar_lea.vmem %s419_s9, 128  ;;  %p516_p9 = scmp.lt.s32.totalorder %s419_s9, %s419_s9 }
  0x1a   :  { %p512_p8 = scmp.ne.s32.totalorder %s419_s9, %s511_s10  ;;  %p517_p10 = scmp.lt.s32.totalorder %s511_s10, %s511_s10 }
  0x1b   :  { %v36_v14 = vmul.f32 1.442695, %v35_v13 }
  0x1c   :  { %p518_p11 = por %p517_p10, %p516_p9 }
  0x1d   :  { %483 = vpow2.f32 %v36_v14 }
  0x1e   :  { %p519_p12 = pnand %p518_p11, %p512_p8 }
  0x27   :  { %v484_v15 = vpop.eup %483 }
  0x94   :  { %v42_v16 = vpop.permute.xlu0 %41 }
  0x95   :  { %v597_v17 = vmul.f32 %v484_v15, %v42_v16 }
  0x97   :  { %v48_v18 = vand.u32 2139095040, %v597_v17  ;;  %v45_v22 = vand.u32 2147483647, %v597_v17  ;;  %vm47_vm8 = vcmp.lt.s32.totalorder %v597_v17, 0 }
  0x99   :  { %v49_v19 = vshrl.u32 %v48_v18, 23  ;;  %v52_v25 = vand.u32 8388607, %v45_v22  ;;  %vm46_vm9 = vcmp.le.f32.partialorder %v45_v22, 0.7853982 }
  0x9b   :  { %v427_v20 = vadd.s32 4294967169, %v49_v19  ;;  %v53_v44 = vor.u32 8388608, %v52_v25 }
  0x9d   :  { %v55_v21 = vadd.s32 1, %v427_v20  ;;  %v93_v58 = vshll.u32 %v53_v44, 8 }
  0x9f   :  { %vm56_vm1 = vcmp.gt.s32.totalorder %v55_v21, 0 }
  0xa0   :  { %v57_v23 = vsel %vm56_vm1, %v55_v21, 0  ;;  %vm137_vm1 = vweird.f32 %v597_v17 }
  0xa1   :  { %v59_v24 = vand.u32 31, %v57_v23  ;;  %v58_v27 = vshrl.u32 %v57_v23, 5 }
  0xa3   :  { %v60_v26 = vsub.s32 32, %v59_v24  ;;  %v62_v29 = vshll.u32 %v544_v28, %v59_v24  ;;  %v65_v31 = vshll.u32 %v545_v30, %v59_v24  ;;  %v68_v35 = vshll.u32 %v546_v33, %v59_v24 }
  0xa4   :  { %v71_v38 = vshll.u32 %v547_v36, %v59_v24  ;;  %v74_v41 = vshll.u32 %v548_v39, %v59_v24  ;;  %vm77_vm2 = vcmp.lt.s32.totalorder %v58_v27, 1  ;;  %vm80_vm3 = vcmp.lt.s32.totalorder %v58_v27, 4 }
  0xa5   :  { %v63_v32 = vshrl.u32 %v545_v30, %v60_v26  ;;  %v66_v34 = vshrl.u32 %v546_v33, %v60_v26  ;;  %v69_v37 = vshrl.u32 %v547_v36, %v60_v26  ;;  %v72_v40 = vshrl.u32 %v548_v39, %v60_v26 }
  0xa6   :  { %v75_v43 = vshrl.u32 %v549_v42, %v60_v26  ;;  %v61_v53 = vshrl.u32 %v544_v28, %v60_v26  ;;  %vm79_vm4 = vcmp.lt.s32.totalorder %v58_v27, 3  ;;  %vm78_vm5 = vcmp.lt.s32.totalorder %v58_v27, 2 }
  0xa7   :  { %v64_v45 = vor.u32 %v63_v32, %v62_v29  ;;  %v67_v46 = vor.u32 %v66_v34, %v65_v31  ;;  %v70_v47 = vor.u32 %v69_v37, %v68_v35  ;;  %v73_v48 = vor.u32 %v72_v40, %v71_v38 }
  0xa8   :  { %v76_v49 = vor.u32 %v75_v43, %v74_v41 }
  0xa9   :  { %v82_v50 = vsel %vm80_vm3, %v70_v47, 2102212464  ;;  %v85_v51 = vsel %vm77_vm2, %v64_v45, %v67_v46  ;;  %v89_v52 = vsel %vm77_vm2, %v67_v46, %v70_v47  ;;  %v86_v54 = vsel %vm80_vm3, %v73_v48, 920167782 }
  0xaa   :  { %v90_v55 = vsel %vm80_vm3, %v76_v49, 1326507024  ;;  %v87_v56 = vsel %vm79_vm4, %v70_v47, %v86_v54  ;;  %v81_v59 = vsel %vm77_vm2, %v61_v53, %v64_v45  ;;  %v83_v60 = vsel %vm79_vm4, %v67_v46, %v82_v50  ;;  %v437_v53 = vld [vmem:[%s638_s3] ss:$0 sm:$0xff] }
  0xab   :  { %v91_v57 = vsel %vm79_vm4, %v73_v48, %v90_v55  ;;  %v88_v61 = vsel %vm78_vm5, %v85_v51, %v87_v56  ;;  %v84_v3 = vsel %vm78_vm5, %v81_v59, %v83_v60 }
  0xac   :  { %v92_v62 = vsel %vm78_vm5, %v89_v52, %v91_v57  ;;  %v606_v1 = vmul.u32.u64.low %v93_v58, %v88_v61  ;;  %v607_v2 = vmul.u32.u64.high %v93_v58, %v88_v61, %v606_v1  ;;  %v100_v5 = vmul.u32 %v93_v58, %v84_v3 }
  0xad   :  { %v603_v63 = vmul.u32.u64.low %v93_v58, %v92_v62  ;;  %v604_v0 = vmul.u32.u64.high %v93_v58, %v92_v62, %v603_v63 }
  0xae   :  { %v103_v4 = vadd.s32 1, %v607_v2 }
  0xaf   :  { %vm102_vm6 = vc.u32 %v604_v0, %v606_v1  ;;  %v101_v18 = vadd.s32 %v606_v1, %v604_v0 }
  0xb0   :  { %v104_v6 = vsel %vm102_vm6, %v103_v4, %v607_v2 }
  0xb1   :  { %v105_v7 = vadd.s32 %v104_v6, %v100_v5 }
  0xb3   :  { %v106_v8 = vadd.s32 536870912, %v105_v7 }
  0xb5   :  { %v107_v9 = vshrl.u32 %v106_v8, 30 }
  0xb7   :  { %v108_v10 = vshll.u32 %v107_v9, 30  ;;  %v131_v31 = vsub.s32 4, %v107_v9 }
  0xb9   :  { %v109_v11 = vsub.s32 %v105_v7, %v108_v10  ;;  %v132_v34 = vsel %vm47_vm8, %v131_v31, %v107_v9 }
  0xba   :  { %v134_v36 = vsel %vm46_vm9, 0, %v132_v34 }
  0xbb   :  { %v111_v12 = vsub.s32 0, %v109_v11  ;;  %v138_v37 = vadd.s32 3, %v134_v36  ;;  %v244_v38 = vand.u32 3, %v134_v36 }
  0xbd   :  { %v428_v13 = vmin.u32 %v111_v12, %v109_v11  ;;  %v139_v39 = vand.u32 3, %v138_v37  ;;  %vm249_vm10 = vcmp.eq.s32.totalorder %v244_v38, 2  ;;  %vm246_vm13 = vcmp.eq.s32.totalorder %v244_v38, 0 }
  0xbe   :  { %vm245_vm15 = vcmp.lt.s32.totalorder %v244_v38, 2 }
  0xbf   :  { %v113_v14 = vclz %v428_v13  ;;  %vm144_vm12 = vcmp.eq.s32.totalorder %v139_v39, 2  ;;  %vm141_vm14 = vcmp.eq.s32.totalorder %v139_v39, 0  ;;  %vm140_vm0 = vcmp.lt.s32.totalorder %v139_v39, 2 }
  0xc1   :  { %v429_v15 = vadd.s32 4294967294, %v113_v14 }
  0xc3   :  { %vm430_vm7 = vcmp.lt.s32.totalorder %v429_v15, 0 }
  0xc4   :  { %v116_v16 = vsel %vm430_vm7, 0, %v429_v15 }
  0xc5   :  { %v117_v19 = vsub.s32 32, %v116_v16  ;;  %v121_v20 = vsub.s32 4294967266, %v116_v16  ;;  %v118_v21 = vshll.u32 %v109_v11, %v116_v16 }
  0xc7   :  { %v119_v23 = vshrl.u32 %v101_v18, %v117_v19  ;;  %v122_v24 = vadd.s32 127, %v121_v20 }
  0xc9   :  { %v120_v25 = vor.u32 %v119_v23, %v118_v21  ;;  %v123_v26 = vshll.u32 %v122_v24, 23 }
  0xcb   :  { %v124_v27 = vor.u32 4788187, %v123_v26  ;;  %v127_v29 = vcvt.s32.f32 %v120_v25 }
  0xcd   :  { %v125_v28 = vand.u32 2147483647, %v124_v27 }
  0xcf   :  { %v128_v30 = vmul.f32 %v127_v29, %v125_v28 }
  0xd1   :  { %v129_v32 = vxor.u32 2147483648, %v128_v30 }
  0xd3   :  { %v130_v33 = vsel %vm47_vm8, %v129_v32, %v128_v30 }
  0xd4   :  { %v133_v35 = vsel %vm46_vm9, %v597_v17, %v130_v33 }
  0xd5   :  { %485 = vcosq.f32 %v133_v35 }
  0xd6   :  { %487 = vsinq.f32 %v133_v35 }
  0xdf   :  { %v486_v40 = vpop.eup %485 }
  0xe0   :  { %v488_v41 = vpop.eup %487  ;;  %v145_v42 = vxor.u32 2147483648, %v486_v40 }
  0xe1   :  { %v142_v43 = vxor.u32 2147483648, %v488_v41 }
  0xe2   :  { %v251_v44 = vsel %vm249_vm10, %v145_v42, %v488_v41  ;;  %v146_v22 = vsel %vm144_vm12, %v145_v42, %v488_v41 }
  0xe3   :  { %v248_v45 = vsel %vm246_vm13, %v486_v40, %v142_v43  ;;  %v143_v46 = vsel %vm141_vm14, %v486_v40, %v142_v43 }
  0xe4   :  { %v252_v47 = vsel %vm245_vm15, %v248_v45, %v251_v44  ;;  %v147_v48 = vsel %vm140_vm0, %v143_v46, %v146_v22 }
  0xe5   :  { %v253_v49 = vsel %vm137_vm1, nan, %v252_v47  ;;  %v148_v50 = vsel %vm137_vm1, nan, %v147_v48 }
  0xe6   :  { %449 = vmatmul.mubr.msk.f32.vlgmr.msra.gmra.mrb[0].mxu0 %vm256_vm11, %v253_v49  ;;  %456 = vmatmul.mubr.msk.f32.vlgmr.msra.gmra.mrb[0].mxu1 %vm256_vm11, %v148_v50 }
 0x1b9   :  { %v326_v51 = vpop.f32.mrb[0].mxu0  ;;  %v399_v52 = vpop.f32.mrb[0].mxu1 }
 0x1ba   :  { %v400_v54 = vadd.f32 %v399_v52, %v326_v51  ;;  %v450_v55 = vpop.f32.mrb[1].mxu0  ;;  %v457_v56 = vpop.f32.mrb[1].mxu1 }
 0x1bc   :  { %v410_v17 = vadd.f32 %v437_v53, %v400_v54 }
 0x1be   :  { %411 = vst [vmem:[#allocation5] sm:$0xff] %v410_v17 }
 0x1bf   :  { %522 = shalt.err (!%p519_p12)
}
 0x1c0   :  { %s523_s13 = scalar_lea.hbm %s639_s4, 128 }
 0x1c1   :  { %p524_p13 = scmp.ne.s32.totalorder %s639_s4, %s523_s13  ;;  %p527_p0 = scmp.lt.u32.totalorder %s523_s13, %s639_s4 }
 0x1c3   :  { %p529_p1 = pnand %p527_p0, %p524_p13 }
 0x1c5   :  { %532 = shalt.err (!%p529_p1)
}
 0x1c6   :  { %421 = dma.vmem_to_hbm [thread:$0]  %s419_s9, 128, %s639_s4, [#allocation4]  }
 0x1c7   :  { %535 = dma.done.wait [#allocation4], 128  }
 0x1c8   :  { %536 = vsyncadd [#allocation4], 4294967168 }
 0x1c9   :  { %425 = vsyncpa [#allocation3], 1 }
 0x1ca   :  { %426 = vsyncpa [#allocation4], 1 }

</bundles_post_ra>
